<compile_context>
chip_gen: v7x
topology: tpu7x:2x2x1
jax: 0.10.0
libtpu: 0.0.40
codegen_flags: <defaults>
</compile_context>

<pallas_src>
import jax
import jax.numpy as jnp
from jax.experimental import pallas as pl
from jax.experimental.pallas import tpu as pltpu


def _make_layernorm_kernel(eps):
    def _layernorm_kernel(x_ref, w_ref, b_ref, o_ref):
        # x_ref: [rows, H]; w_ref/b_ref: [1, H]; o_ref: [rows, H]
        x = x_ref[...].astype(jnp.float32)
        mean = jnp.mean(x, axis=-1, keepdims=True)           # [rows, 1]
        xc = x - mean
        var = jnp.mean(xc * xc, axis=-1, keepdims=True)       # biased variance
        inv = jax.lax.rsqrt(var + eps)                        # EUP rsqrt (free slot)
        y = xc * inv
        w = w_ref[...].astype(jnp.float32)                    # [1, H] broadcast
        b = b_ref[...].astype(jnp.float32)
        o_ref[...] = (w * y + b).astype(o_ref.dtype)
    return _layernorm_kernel


def _pick_block_rows(n_rows, hidden, itemsize,
                     vmem_budget_bytes=24 << 20,   # conservative: fits v7x/v5e
                     max_rows=512,                 # roofline knee (~85% of BW)
                     min_blocks=8):                # keep megacore + pipeline busy
    """VMEM/dtype-aware row-tile size (multiple of 8, sublane aligned)."""
    # Per-row pipeline footprint:
    #   2 input double-buffers + 2 output double-buffers (I/O dtype)
    #   + ~2 f32 temporaries (x/xc/y) inside the kernel body.
    per_row_bytes = hidden * (2 * itemsize + 2 * itemsize + 2 * 4)
    rows_vmem = (vmem_budget_bytes // max(per_row_bytes, 1)) // 8 * 8
    rows = max(8, min(max_rows, rows_vmem))

    # Prefer >= min_blocks grid steps: shrink rows toward ceil(N/min_blocks),
    # rounded up to a multiple of 8, never below 8.
    rows_for_blocks = max(8, ((pl.cdiv(n_rows, min_blocks)) + 7) // 8 * 8)
    rows = min(rows, rows_for_blocks)
    return rows


def medical_bert_layernorm(x, weight, bias, eps=1e-12):
    """x: [..., H]; weight, bias: [H]. LayerNorm over the last dim."""
    orig_shape = x.shape
    H = orig_shape[-1]
    x2 = x.reshape(-1, H)                    # [N, H], lane-dense, no transpose
    N = x2.shape[0]

    itemsize = jnp.dtype(x.dtype).itemsize
    rows = _pick_block_rows(N, H, itemsize)
    grid = (pl.cdiv(N, rows),)               # last block padded; writes masked

    w2 = weight.reshape(1, H)
    b2 = bias.reshape(1, H)
    param_bytes = H * (jnp.dtype(weight.dtype).itemsize
                       + jnp.dtype(bias.dtype).itemsize)

    cost = pl.CostEstimate(
        flops=7 * N * H,                     # sub, sq, 2x mean-adds, mul, scale, shift
        transcendentals=N,                   # one rsqrt per row
        bytes_accessed=2 * N * H * itemsize + param_bytes,
    )

    out = pl.pallas_call(
        _make_layernorm_kernel(float(eps)),
        out_shape=jax.ShapeDtypeStruct((N, H), x.dtype),
        grid_spec=pl.GridSpec(
            grid=grid,
            in_specs=[
                pl.BlockSpec((rows, H), lambda i: (i, 0)),   # activations tile
                pl.BlockSpec((1, H), lambda i: (0, 0)),      # weight (resident)
                pl.BlockSpec((1, H), lambda i: (0, 0)),      # bias   (resident)
            ],
            out_specs=pl.BlockSpec((rows, H), lambda i: (i, 0)),
        ),
        compiler_params=pltpu.CompilerParams(
            dimension_semantics=("parallel",),
            vmem_limit_bytes=64 << 20,       # v5e default scoped (16 MiB) is too small
        ),
        cost_estimate=cost,
    )(x2, w2, b2)

    return out.reshape(orig_shape)


def _reference(x, weight, bias, eps=1e-12):
    u = jnp.mean(x, axis=-1, keepdims=True)
    s = x - u
    s = jnp.mean(s * s, axis=-1, keepdims=True)
    xn = (x - u) / jnp.sqrt(s + eps)
    return weight * xn + bias


if __name__ == "__main__":
    # config consistent with the module: batch=2, seq=8, hidden=32
    B, S, H = 2, 8, 32

    key = jax.random.PRNGKey(0)
    k_x, k_w, k_b = jax.random.split(key, 3)

    x = jax.random.normal(k_x, (B, S, H), dtype=jnp.float32)
    # non-trivial affine params so the scale/shift path is actually exercised
    weight = 1.0 + 0.1 * jax.random.normal(k_w, (H,), dtype=jnp.float32)
    bias = 0.1 * jax.random.normal(k_b, (H,), dtype=jnp.float32)

    out = medical_bert_layernorm(x, weight, bias, eps=1e-12)
    out = jax.block_until_ready(out)

    ref = _reference(x, weight, bias, eps=1e-12)
    assert out.shape == (B, S, H)
    assert jnp.allclose(out, ref, atol=1e-5, rtol=1e-5), "mismatch vs JAX reference"

    # also exercise an N that does NOT divide the row tile (cdiv / masked path)
    x_odd = jax.random.normal(key, (3, 13, H), dtype=jnp.float32)
    out_odd = jax.block_until_ready(
        medical_bert_layernorm(x_odd, weight, bias, eps=1e-12))
    assert jnp.allclose(out_odd, _reference(x_odd, weight, bias), atol=1e-5, rtol=1e-5)

    print("KERNEL_OK")
</pallas_src>

<mosaic_0001>
module attributes {stable_mosaic.version = 11 : i64} {
  func.func @_layernorm_kernel(%arg0: i32, %arg1: memref<8x32xf32, #tpu.memory_space<vmem>>, %arg2: memref<1x32xf32, #tpu.memory_space<vmem>>, %arg3: memref<1x32xf32, #tpu.memory_space<vmem>>, %arg4: memref<8x32xf32, #tpu.memory_space<vmem>>) attributes {dimension_semantics = [#tpu.dimension_semantics<parallel>], iteration_bounds = array<i64: 2>, scalar_prefetch = 0 : i64, scratch_operands = 0 : i64, tpu.core_type = #tpu.core_type<tc>, window_params = [{transform_indices = @transform_0, window_bounds = array<i64: 8, 32>}, {pipeline_mode = #tpu.pipeline_mode<synchronous>, transform_indices = @transform_1, window_bounds = array<i64: 1, 32>}, {pipeline_mode = #tpu.pipeline_mode<synchronous>, transform_indices = @transform_2, window_bounds = array<i64: 1, 32>}, {transform_indices = @transform_3, window_bounds = array<i64: 8, 32>}]} {
    %c0 = arith.constant 0 : index
    %c0_0 = arith.constant 0 : index
    %0 = vector.load %arg1[%c0, %c0_0] : memref<8x32xf32, #tpu.memory_space<vmem>>, vector<8x32xf32>
    %cst = arith.constant dense<0.000000e+00> : vector<8xf32>
    %1 = vector.multi_reduction <add>, %0, %cst [1] : vector<8x32xf32> to vector<8xf32>
    %2 = vector.shape_cast %1 : vector<8xf32> to vector<8x1xf32>
    %cst_1 = arith.constant 3.200000e+01 : f32
    %3 = vector.broadcast %cst_1 : f32 to vector<8x1xf32>
    %4 = arith.divf %2, %3 : vector<8x1xf32>
    %5 = vector.broadcast %4 : vector<8x1xf32> to vector<8x32xf32>
    %6 = arith.subf %0, %5 : vector<8x32xf32>
    %7 = arith.mulf %6, %6 : vector<8x32xf32>
    %cst_2 = arith.constant dense<0.000000e+00> : vector<8xf32>
    %8 = vector.multi_reduction <add>, %7, %cst_2 [1] : vector<8x32xf32> to vector<8xf32>
    %9 = vector.shape_cast %8 : vector<8xf32> to vector<8x1xf32>
    %cst_3 = arith.constant 3.200000e+01 : f32
    %10 = vector.broadcast %cst_3 : f32 to vector<8x1xf32>
    %11 = arith.divf %9, %10 : vector<8x1xf32>
    %cst_4 = arith.constant 9.99999996E-13 : f32
    %12 = vector.broadcast %cst_4 : f32 to vector<8x1xf32>
    %13 = arith.addf %11, %12 : vector<8x1xf32>
    %14 = math.rsqrt %13 : vector<8x1xf32>
    %15 = vector.broadcast %14 : vector<8x1xf32> to vector<8x32xf32>
    %16 = arith.mulf %6, %15 : vector<8x32xf32>
    %c0_5 = arith.constant 0 : index
    %c0_6 = arith.constant 0 : index
    %17 = vector.load %arg2[%c0_5, %c0_6] : memref<1x32xf32, #tpu.memory_space<vmem>>, vector<1x32xf32>
    %c0_7 = arith.constant 0 : index
    %c0_8 = arith.constant 0 : index
    %18 = vector.load %arg3[%c0_7, %c0_8] : memref<1x32xf32, #tpu.memory_space<vmem>>, vector<1x32xf32>
    %19 = vector.broadcast %17 : vector<1x32xf32> to vector<8x32xf32>
    %20 = arith.mulf %19, %16 : vector<8x32xf32>
    %21 = vector.broadcast %18 : vector<1x32xf32> to vector<8x32xf32>
    %22 = arith.addf %20, %21 : vector<8x32xf32>
    %c0_9 = arith.constant 0 : index
    %c0_10 = arith.constant 0 : index
    %23 = vector.load %arg4[%c0_9, %c0_10] : memref<8x32xf32, #tpu.memory_space<vmem>>, vector<8x32xf32>
    tpu.vector_store %arg4[%c0_9, %c0_10], %22 {strides = array<i32>} : memref<8x32xf32, #tpu.memory_space<vmem>>, vector<8x32xf32>,
    return
  }
  func.func @transform_0(%arg0: i32) -> (i32, i32) {
    %c0_i32 = arith.constant 0 : i32
    %c0_i32_0 = arith.constant 0 : i32
    return %arg0, %c0_i32 : i32, i32
  }
  func.func @transform_1(%arg0: i32) -> (i32, i32) {
    %c0_i32 = arith.constant 0 : i32
    %c0_i32_0 = arith.constant 0 : i32
    %c0_i32_1 = arith.constant 0 : i32
    return %c0_i32, %c0_i32_0 : i32, i32
  }
  func.func @transform_2(%arg0: i32) -> (i32, i32) {
    %c0_i32 = arith.constant 0 : i32
    %c0_i32_0 = arith.constant 0 : i32
    %c0_i32_1 = arith.constant 0 : i32
    return %c0_i32, %c0_i32_0 : i32, i32
  }
  func.func @transform_3(%arg0: i32) -> (i32, i32) {
    %c0_i32 = arith.constant 0 : i32
    %c0_i32_0 = arith.constant 0 : i32
    return %arg0, %c0_i32 : i32, i32
  }
}

</mosaic_0001>

<bundles_post_ra>
// kernel: tpu_custom_call.1
= control target key start
LH: loop header
LB: loop body
LE: loop exit
PB: predicated region body
PF: predicated region fallthrough
CT: control target
= control target key end

     0   :  { %8 = vsyncpa [#allocation3], 0  ;;  %s845_s0 = inlined_call_operand.hbm [shape: f32[16,32], index: 0, kind: input, shape index: {}]   ;;  %s846_s1 = inlined_call_operand.hbm [shape: f32[1,32], index: 1, kind: input, shape index: {}]   ;;  %s847_s2 = inlined_call_operand.hbm [shape: f32[1,32], index: 2, kind: input, shape index: {}]   ;;  %s848_s3 = inlined_call_operand.hbm [shape: f32[16,32], index: 3, kind: output, shape index: {}]  }
   0x1   :  { %10 = vsyncpa [#allocation3 + $0x1], 0 }
   0x2   :  { %11 = vsyncpa [#allocation6], 0 }
   0x3   :  { %12 = vsyncpa [#allocation4], 0 }
   0x4   :  { %14 = vsyncpa [#allocation4 + $0x1], 0  ;;  %s616_s12 = smov 0   ;;  %s618_s13 = smov 0  }
   0x5   :  { %s620_s14 = smov 0   ;;  %s622_s15 = smov 0  }
   0x6 LB: > { %s637_s16 = sadd.s32 4294967295, %s590_s15   ;;  %s347_s17 = sadd.s32 4294967294, %s590_s15   ;;  %s590_s15 = sphi %s622_s15, %s868_s15   ;;  %s586_s14 = sphi %s620_s14, %s867_s14   ;;  %s582_s13 = sphi %s618_s13, %s866_s13   ;;  %s578_s12 = sphi %s616_s12, %s865_s12  }
   0x7   : > { %p40_p0 = scmp.ne.s32.totalorder %s582_s13, %s578_s12  ;;  %p849_p1 = scmp.eq.s32.totalorder %s637_s16, 0 }
   0x8   : > { %p112_p3 = scmp.eq.s32.totalorder %s347_s17, 1  ;;  %p348_p5 = scmp.ge.s32.totalorder %s590_s15, 1 }
   0x9   : > { %p646_p4 = por %p849_p1, %p40_p0  ;;  %p119_p7 = scmp.lt.s32.totalorder %s590_s15, 3 }
   0xa   : > { %p651_p6 = por %p112_p3, %p40_p0  ;;  %s592_s21 = smov [#allocation5]  }
   0xb   : > { %s852_s18 = scalar_select %p646_p4, 1, 0 }
   0xc   : > { %s853_s19 = scalar_select %p651_p6, 1, 0 }
   0xd   : > { %p656_p8 = pnand %p348_p5, %p119_p7  ;;  %s132_s22 = sshll.u32 %s592_s21, 4  ;;  %s133_s22 = int_to_ptr.vmem [resolvable:$true] %s132_s22 }
   0xe   : > { %s593_s23 = smov [#allocation7]   ;;  %s672_s26 = sadd.s32 1, %s590_s15  }
   0xf   : > { %s854_s20 = scalar_select %p656_p8, 1, 0 }
  0x10   : > { %p377_p10 = pneg %p656_p8  ;;  %s143_s24 = sshll.u32 %s593_s23, 4  ;;  %s669_s24 = int_to_ptr.vmem [resolvable:$true] %s143_s24 }
  0x11   : > { %s24_s27 = ssub.s32 %s590_s15, %s672_s26  ;;  %s434_s30 = scalar_lea.hbm %s846_s1, 16 }
  0x12   : > { %p665_p11 = pnand %p377_p10, %p849_p1  ;;  %p435_p12 = scmp.ne.s32.totalorder %s846_s1, %s434_s30 }
  0x13   : > { %p441_p5 = scmp.lt.u32.totalorder %s434_s30, %s846_s1 }
  0x14   : > { %p436_p13 = pneg %p665_p11 }
  0x16   : > { %p437_p0 = pnand %p436_p13, %p435_p12 }
  0x18   : > { %p438_p3 = pneg %p437_p0 }
  0x1a   : > { %p443_p7 = pnand %p441_p5, %p438_p3 }
  0x1c   : > { %446 = shalt.err (!%p443_p7)
}
  0x1d   : > { %s447_s8 = scalar_lea.vmem %s133_s22, 16  ;;  %s454_s9 = scalar_lea.vmem %s133_s22, 32 }
  0x1e   : > { %p448_p10 = scmp.ne.s32.totalorder %s133_s22, %s447_s8  ;;  %p455_p2 = scmp.lt.s32.totalorder %s133_s22, %s133_s22 }
  0x1f   : > { %p456_p6 = scmp.lt.s32.totalorder %s454_s9, %s447_s8 }
  0x20   : > { %p450_p9 = pnand %p448_p10, %p436_p13 }
  0x21   : > { %p457_p4 = por %p456_p6, %p455_p2 }
  0x22   : > { %p451_p1 = pneg %p450_p9 }
  0x24   : > { %p458_p8 = pnand %p457_p4, %p451_p1 }
  0x26   : > { %461 = shalt.err (!%p458_p8)
}
  0x27   : > { %380 = dma.hbm_to_vmem [thread:$0]  (!%p665_p11), %s846_s1, 16, %s133_s22, [#allocation6]  }
  0x28   : > { %s462_s23 = scalar_lea.hbm %s847_s2, 16 }
  0x29   : > { %p463_p9 = scmp.ne.s32.totalorder %s847_s2, %s462_s23  ;;  %p469_p4 = scmp.lt.u32.totalorder %s462_s23, %s847_s2 }
  0x2b   : > { %p465_p2 = pnand %p463_p9, %p436_p13 }
  0x2d   : > { %p466_p1 = pneg %p465_p2 }
  0x2f   : > { %p471_p6 = pnand %p469_p4, %p466_p1 }
  0x31   : > { %474 = shalt.err (!%p471_p6)
}
  0x32   : > { %s475_s22 = scalar_lea.vmem %s669_s24, 16  ;;  %s482_s5 = scalar_lea.vmem %s669_s24, 32 }
  0x33   : > { %p476_p8 = scmp.ne.s32.totalorder %s669_s24, %s475_s22  ;;  %p483_p3 = scmp.lt.s32.totalorder %s669_s24, %s669_s24 }
  0x34   : > { %p484_p5 = scmp.lt.s32.totalorder %s482_s5, %s475_s22 }
  0x35   : > { %p478_p12 = pnand %p476_p8, %p436_p13 }
  0x36   : > { %p485_p7 = por %p484_p5, %p483_p3 }
  0x37   : > { %p479_p0 = pneg %p478_p12 }
  0x39   : > { %p486_p10 = pnand %p485_p7, %p479_p0 }
  0x3b   : > { %489 = shalt.err (!%p486_p10)
}
  0x3c   : > { %383 = dma.hbm_to_vmem [thread:$0]  (!%p665_p11), %s847_s2, 16, %s669_s24, [#allocation6]  }
  0x3d   : > { %p25_p13 = scmp.eq.s32.totalorder %s24_s27, 0  ;;  %s27_s8 = sadd.s32 1, %s586_s14 }
  0x3e   : > { %p34_p9 = scmp.ne.s32.totalorder %s586_s14, %s582_s13  ;;  %p35_p2 = scmp.eq.s32.totalorder %s590_s15, 0 }
  0x3f   : > { %s732_s25 = scalar_select %p25_p13, %s586_s14, %s27_s8  }
  0x40   : > { %p36_p1 = por %p35_p2, %p34_p9  ;;  %p856_p4 = scmp.eq.s32.totalorder %s637_s16, 1 }
  0x41   : > { %p394_p8 = scmp.lt.s32.totalorder %s590_s15, 2  ;;  %s154_s10 = sand.u32 1, %s586_s14  }
  0x42   : > { %p736_p6 = por %p856_p4, %p34_p9  ;;  %s352_s11 = sshll.u32 %s154_s10, 3 }
  0x43   : > { %s353_s17 = sshll.u32 %s590_s15, 7  ;;  %s158_s27 = scalar_lea.vmem [#allocation2], %s352_s11 }
  0x44   : > { %s746_s24 = scalar_lea.hbm %s845_s0, %s353_s17  ;;  %s165_s28 = sshll.u32 %s158_s27, 4  ;;  %s748_s28 = int_to_ptr.vmem [resolvable:$true] %s165_s28 }
  0x45   : > { %p750_p11 = pnand %p394_p8, %p36_p1  ;;  %s155_s30 = scalar_lea.sflag [#allocation3], %s154_s10 }
  0x46   : > { %s490_s4 = scalar_lea.hbm %s746_s24, 128  ;;  %s495_s6 = scalar_lea.hbm %s845_s0, 256 }
  0x47   : > { %p491_p12 = scmp.ne.s32.totalorder %s746_s24, %s490_s4  ;;  %p492_p0 = pneg %p750_p11 }
  0x48   : > { %p496_p7 = scmp.lt.u32.totalorder %s746_s24, %s845_s0  ;;  %p497_p10 = scmp.lt.u32.totalorder %s495_s6, %s490_s4 }
  0x49   : > { %p493_p3 = pnand %p492_p0, %p491_p12  ;;  %p499_p9 = scmp.lt.u32.totalorder %s490_s4, %s746_s24 }
  0x4a   : > { %p498_p13 = por %p497_p10, %p496_p7 }
  0x4b   : > { %p494_p5 = pneg %p493_p3 }
  0x4c   : > { %p500_p2 = por %p499_p9, %p498_p13 }
  0x4e   : > { %p501_p1 = pnand %p500_p2, %p494_p5 }
  0x50   : > { %504 = shalt.err (!%p501_p1)
}
  0x51   : > { %s505_s10 = scalar_lea.vmem %s748_s28, 128  ;;  %s594_s11 = smov [#allocation2]  }
  0x52   : > { %p506_p4 = scmp.ne.s32.totalorder %s748_s28, %s505_s10  ;;  %s510_s17 = sshll.u32 %s594_s11, 4  ;;  %s511_s17 = int_to_ptr.vmem [resolvable:$false] %s510_s17 }
  0x53   : > { %s512_s21 = scalar_lea.vmem %s511_s17, 256  ;;  %p513_p3 = scmp.lt.s32.totalorder %s748_s28, %s511_s17 }
  0x54   : > { %p508_p8 = pnand %p506_p4, %p492_p0  ;;  %p514_p7 = scmp.lt.s32.totalorder %s512_s21, %s505_s10 }
  0x56   : > { %p509_p12 = pneg %p508_p8  ;;  %p515_p10 = por %p514_p7, %p513_p3 }
  0x58   : > { %p516_p13 = pnand %p515_p10, %p509_p12 }
  0x5a   : > { %519 = shalt.err (!%p516_p13)
}
  0x5b   : > { %387 = dma.hbm_to_vmem [thread:$0]  (!%p750_p11), %s746_s24, 128, %s748_s28, %s155_s30  }
  0x5c   : > { %p859_p5 = scmp.ne.s32.totalorder %s854_s20, 0 }
  0x5d   : > { %s782_s23 = sand.u32 (!%p859_p5), 1, %s582_s13   ;;  %p860_p0 = scmp.ne.s32.totalorder (!%p859_p5), %s852_s18, 0 }
  0x5e   : > { %174 = sbr.rel (%p859_p5) target bundleno = 433 (0x1b1), region = 32  ;;  %s355_s27 = sshll.u32 (!%p859_p5), %s782_s23, 3 }
  0x5f   : > { %s177_s4 = scalar_lea.sflag (!%p859_p5), [#allocation3], %s782_s23  ;;  %s180_s22 = scalar_lea.vmem (!%p859_p5), [#allocation2], %s355_s27 }
  0x65   : > { %565 = dma.done.wait (%p860_p0), %s177_s4, 128  }
  0x66   : > { %567 = vsyncadd (%p860_p0), %s177_s4, 4294967168  ;;  %p861_p9 = scmp.eq.s32.totalorder %s637_s16, 0 }
  0x68   : > { %569 = dma.done.wait (%p861_p9), [#allocation6], 32   ;;  %p862_p11 = pmov %p861_p9 }
  0x69   : > { %vm212_vm0 = vcmask 261120   ;;  %v211_v0 = vld [vmem:[%s180_s22] sm:$0xff]  ;;  %v359_v11 = vld [vmem:[#allocation5] ss:$0 sm:$0xff]  ;;  %v360_v13 = vld [vmem:[#allocation7] ss:$0 sm:$0xff] }
  0x6a   : > { %571 = vsyncadd (%p862_p11), [#allocation6], 4294967264  ;;  %v213_v1 = vsel %vm212_vm0, %v211_v0, 0.0  ;;  %s362_s18 = sshll.u32 %s637_s16, 7  ;;  %s210_s20 = scalar_lea.vmem [#allocation8], %s355_s27 }
  0x6b   : > { %214 = vadd.xlane.f32.xlu0 %v213_v1  ;;  %s258_s24 = sshll.u32 %s210_s20, 4  ;;  %s800_s30 = scalar_lea.hbm %s848_s3, %s362_s18  ;;  %s802_s24 = int_to_ptr.vmem [resolvable:$true] %s258_s24 }
  0x6c   : > { %s245_s5 = scalar_lea.sflag [#allocation4], %s782_s23  ;;  %s520_s6 = scalar_lea.vmem %s802_s24, 128 }
  0x6d   : > { %p521_p2 = scmp.ne.s32.totalorder %s802_s24, %s520_s6  ;;  %s595_s16 = smov [#allocation8]  }
  0x6e   : > { %s524_s7 = sshll.u32 %s595_s16, 4  ;;  %s525_s7 = int_to_ptr.vmem [resolvable:$false] %s524_s7 }
  0x6f   : > { %p522_p1 = pnand %p521_p2, %p736_p6  ;;  %s526_s8 = scalar_lea.vmem %s525_s7, 256 }
  0x70   : > { %p527_p8 = scmp.lt.s32.totalorder %s802_s24, %s525_s7  ;;  %p528_p12 = scmp.lt.s32.totalorder %s526_s8, %s520_s6 }
  0x71   : > { %p523_p4 = pneg %p522_p1 }
  0x72   : > { %p529_p3 = por %p528_p12, %p527_p8 }
  0x74   : > { %p530_p7 = pnand %p529_p3, %p523_p4 }
  0xf8   : > { %v215_v2 = vpop.xlane.xlu0 %214 }
  0xf9   : > { %v217_v3 = vmul.f32 0.03125, %v215_v2 }
  0xfb   : > { %v218_v4 = vsub.f32 %v211_v0, %v217_v3 }
  0xfd   : > { %v219_v5 = vmul.f32 %v218_v4, %v218_v4 }
  0xff   : > { %v220_v6 = vsel %vm212_vm0, %v219_v5, 0.0 }
 0x100   : > { %221 = vadd.xlane.f32.xlu0 %v220_v6 }
 0x18d   : > { %v222_v7 = vpop.xlane.xlu0 %221 }
 0x18e   : > { %v223_v8 = vmul.f32 0.03125, %v222_v7 }
 0x190   : > { %v224_v9 = vadd.f32 1e-12, %v223_v8 }
 0x192   : > { %432 = vrsqrt.f32 %v224_v9 }
 0x19c   : > { %v433_v10 = vpop.eup %432 }
 0x19d   : > { %v226_v12 = vmul.f32 %v433_v10, %v218_v4 }
 0x19f   : > { %v235_v14 = vmul.f32 %v359_v11, %v226_v12 }
 0x1a1   : > { %v242_v15 = vadd.f32 %v360_v13, %v235_v14 }
 0x1a3   : > { %243 = vst.msk [vmem:[%s210_s20] sm:$0xff] %vm212_vm0, %v242_v15 }
 0x1a4   : > { %533 = shalt.err (!%p530_p7)
}
 0x1a5   : > { %s534_s10 = scalar_lea.hbm %s800_s30, 128  ;;  %s538_s21 = scalar_lea.hbm %s848_s3, 256 }
 0x1a6   : > { %p535_p10 = scmp.ne.s32.totalorder %s800_s30, %s534_s10  ;;  %p539_p0 = scmp.lt.u32.totalorder %s800_s30, %s848_s3 }
 0x1a7   : > { %p540_p9 = scmp.lt.u32.totalorder %s538_s21, %s534_s10  ;;  %p542_p2 = scmp.lt.u32.totalorder %s534_s10, %s800_s30 }
 0x1a8   : > { %p536_p13 = pnand %p535_p10, %p736_p6 }
 0x1a9   : > { %p541_p11 = por %p540_p9, %p539_p0 }
 0x1aa   : > { %p537_p5 = pneg %p536_p13 }
 0x1ab   : > { %p543_p1 = por %p542_p2, %p541_p11 }
 0x1ad   : > { %p544_p4 = pnand %p543_p1, %p537_p5 }
 0x1af   : > { %547 = shalt.err (!%p544_p4)
}
 0x1b0   : > { %375 = dma.vmem_to_hbm [thread:$0]  (%p736_p6), %s802_s24, 128, %s800_s30, %s245_s5  }
 0x1b1 PF: > { %s270_s4 = sand.u32 1, %s578_s12   ;;  %p863_p8 = scmp.ne.s32.totalorder %s853_s19, 0 }
 0x1b2   : > { %p864_p12 = scmp.ge.s32.totalorder %s590_s15, 2  ;;  %s271_s22 = scalar_lea.sflag [#allocation4], %s270_s4 }
 0x1b4   : > { %p389_p3 = pnand %p864_p12, %p863_p8 }
 0x1b6   : > { %573 = dma.done.wait (!%p389_p3), %s271_s22, 128  }
 0x1b7   : > { %575 = vsyncadd (!%p389_p3), %s271_s22, 4294967168  ;;  %p17_p7 = scmp.ge.s32.totalorder %s672_s26, 4   ;;  %s865_s12 = smov %s582_s13 }
 0x1b8   : > { %s866_s13 = smov %s586_s14  ;;  %s867_s14 = smov %s732_s25 }
 0x1b9   : > { %s868_s15 = smov %s672_s26  ;;  %19 = sbr.rel (!%p17_p7) target bundleno = 6 (0x6), region = 85 }
 0x1c0   :  { %276 = vsyncpa [#allocation3], 1 }
 0x1c1   :  { %278 = vsyncpa [#allocation3 + $0x1], 1 }
 0x1c2   :  { %279 = vsyncpa [#allocation6], 1 }
 0x1c3   :  { %280 = vsyncpa [#allocation4], 1 }
 0x1c4   :  { %282 = vsyncpa [#allocation4 + $0x1], 1 }

</bundles_post_ra>
